<compile_context>
chip_gen: v7x
topology: tpu7x:2x2x1
jax: 0.10.0
libtpu: 0.0.40
codegen_flags: <defaults>
</compile_context>

<pallas_src>
import functools

import jax
import jax.numpy as jnp
from jax.experimental import pallas as pl
from jax.experimental.pallas import tpu as pltpu

# ---- config (matching config['neuron_nums_c_1'/'neuron_nums_c_2']) ----
NEURAL_NUMS_C_1 = 32
NEURAL_NUMS_C_2 = 32


def _critic_kernel(xT_ref, aT_ref, ws_ref, bs_ref, wa_ref, ba_ref,
                   wqs_ref, wqa_ref, bq_ref, wo_ref, bo_ref, q_ref):
    """Transposed dataflow: batch on the lane axis everywhere.

    xT_ref : (F,  tile_b)   aT_ref : (A,  tile_b)    -- streamed activations
    ws_ref : (n1, F)        wa_ref : (n1, A)         -- resident weights (out, in)
    bs/ba  : (n1, 1)        bq_ref : (n2, 1)         -- bias columns (lane-broadcast)
    wqs/wqa: (n2, n1)       wo_ref : (1, n2)         -- fc_q split halves, fc_ row
    bo_ref : (1, 1) scalar in SMEM
    q_ref  : (1, tile_b)    -- lane-dense output row
    """
    # fc_s + ReLU  -> (n1, tile_b); whole-tile ReLU (no mask / iota needed)
    f_s = jnp.dot(ws_ref[...], xT_ref[...], preferred_element_type=jnp.float32)
    f_s = jnp.maximum(f_s + bs_ref[...], 0.0)

    # fc_a (no ReLU) -> (n1, tile_b)
    f_a = jnp.dot(wa_ref[...], aT_ref[...], preferred_element_type=jnp.float32)
    f_a = f_a + ba_ref[...]

    # fc_q on cat([f_s, f_a]) == split-K over the two halves (avoids any concat)
    h = jnp.dot(wqs_ref[...], f_s, preferred_element_type=jnp.float32)
    h = h + jnp.dot(wqa_ref[...], f_a, preferred_element_type=jnp.float32)
    h = jnp.maximum(h + bq_ref[...], 0.0)                      # (n2, tile_b)

    # final fc_ (n2 -> 1), lane-dense row output
    q = jnp.dot(wo_ref[...], h, preferred_element_type=jnp.float32) + bo_ref[0, 0]
    q_ref[...] = q.astype(q_ref.dtype)


def prepare_critic_params(params):
    """One-time repack of torch-convention params into the kernel layout.

    Call once at init (outside the per-step forward) and reuse the result, so
    the pallas_call is essentially the only op on the forward hot path.
    """
    (w_s, b_s, w_a, b_a, w_q, b_q, w_o, b_o) = params
    n1 = NEURAL_NUMS_C_1
    return (
        w_s.T,                # (n1, F)   fc_s weight, (out, in)
        b_s.reshape(-1, 1),   # (n1, 1)   bias column
        w_a.T,                # (n1, A)
        b_a.reshape(-1, 1),   # (n1, 1)
        w_q[:n1, :].T,        # (n2, n1)  fc_q half acting on f_s
        w_q[n1:, :].T,        # (n2, n1)  fc_q half acting on f_a
        b_q.reshape(-1, 1),   # (n2, 1)
        w_o.reshape(1, -1),   # (1, n2)   final layer as a row
        b_o.reshape(1, 1),    # scalar -> SMEM
    )


def _round_up(n, m):
    return ((n + m - 1) // m) * m


def critic_forward(x, action, prepped, *, tile_b=1024):
    """Pallas Critic.forward(input, action) -> (B, 1).

    `prepped` is the output of prepare_critic_params (hoisted off the hot path).
    On v7x, pass tile_b ≈ round_up(ceil(B/2), 128) so the "parallel" grid axis
    has >= 2 steps and the batch is sharded across both TensorCores.
    """
    assert tile_b % 128 == 0, "tile_b must be a multiple of 128 (lane-dense)"
    (ws_t, bs_c, wa_t, ba_c, wqs_t, wqa_t, bq_c, wo_r, bo) = prepped
    n1, n2 = NEURAL_NUMS_C_1, NEURAL_NUMS_C_2
    B, F = x.shape
    A = action.shape[1]

    # Single cheap feature-major relayout so batch is the lane axis end-to-end.
    # (Replaces the old concat + pad + block-diagonal packing.)
    xT = x.T          # (F, B)
    aT = action.T     # (A, B)

    # Few, large grid steps: per-step overhead dominates at small B, and VMEM
    # is nowhere near a constraint at these tile sizes.
    tile = min(tile_b, _round_up(B, 128))
    n_tiles = pl.cdiv(B, tile)
    b_pad = n_tiles * tile     # ragged tail handled by Pallas edge masking

    out = pl.pallas_call(
        _critic_kernel,
        out_shape=jax.ShapeDtypeStruct((1, b_pad), jnp.float32),
        grid=(n_tiles,),
        in_specs=[
            pl.BlockSpec((F, tile), lambda i: (0, i)),    # activations: streamed
            pl.BlockSpec((A, tile), lambda i: (0, i)),
            pl.BlockSpec((n1, F), lambda i: (0, 0)),      # weights/biases: resident
            pl.BlockSpec((n1, 1), lambda i: (0, 0)),
            pl.BlockSpec((n1, A), lambda i: (0, 0)),
            pl.BlockSpec((n1, 1), lambda i: (0, 0)),
            pl.BlockSpec((n2, n1), lambda i: (0, 0)),
            pl.BlockSpec((n2, n1), lambda i: (0, 0)),
            pl.BlockSpec((n2, 1), lambda i: (0, 0)),
            pl.BlockSpec((1, n2), lambda i: (0, 0)),
            pl.BlockSpec(memory_space=pltpu.MemorySpace.SMEM),  # scalar bias b_o
        ],
        out_specs=pl.BlockSpec((1, tile), lambda i: (0, i)),    # lane-dense row
        compiler_params=pltpu.CompilerParams(
            dimension_semantics=("parallel",),   # megacore-shard batch tiles (v7x)
        ),
    )(xT, aT, ws_t, bs_c, wa_t, ba_c, wqs_t, wqa_t, bq_c, wo_r, bo)

    # Layout plumbing only: lane-dense (1, b_pad) row -> (B, 1) column.
    return out[:, :B].reshape(B, 1)


def init_critic_params(key, feature_numbers, action_numbers):
    """Deterministic init mirroring torch.nn.Linear default (uniform +-1/sqrt(fan_in)).
    Weights stored as [in, out]; biases as [1, out] (torch-like convention)."""
    n1, n2 = NEURAL_NUMS_C_1, NEURAL_NUMS_C_2
    ks = jax.random.split(key, 8)

    def lin(kw, kb, fan_in, fan_out):
        bound = 1.0 / jnp.sqrt(fan_in)
        w = jax.random.uniform(kw, (fan_in, fan_out), jnp.float32, -bound, bound)
        b = jax.random.uniform(kb, (1, fan_out), jnp.float32, -bound, bound)
        return w, b

    w_s, b_s = lin(ks[0], ks[1], feature_numbers, n1)
    w_a, b_a = lin(ks[2], ks[3], action_numbers, n1)
    w_q, b_q = lin(ks[4], ks[5], 2 * n1, n2)
    w_o, b_o = lin(ks[6], ks[7], n2, 1)
    return (w_s, b_s, w_a, b_a, w_q, b_q, w_o, b_o)


def critic_reference(x, action, params):
    """Pure-JAX reference for validation (matches the PyTorch forward)."""
    (w_s, b_s, w_a, b_a, w_q, b_q, w_o, b_o) = params
    f_s = jax.nn.relu(x @ w_s + b_s)
    f_a = action @ w_a + b_a
    cat = jnp.concatenate([f_s, f_a], axis=1)
    q = jax.nn.relu(cat @ w_q + b_q)
    return q @ w_o + b_o


if __name__ == "__main__":
    feature_numbers = 16
    action_numbers = 4
    batch = 200   # not a multiple of 128: exercises the masked ragged tail

    key = jax.random.PRNGKey(0)
    k_x, k_a, k_p = jax.random.split(key, 3)

    x = jax.random.normal(k_x, (batch, feature_numbers), jnp.float32)
    action = jax.random.normal(k_a, (batch, action_numbers), jnp.float32)

    params = init_critic_params(k_p, feature_numbers, action_numbers)
    prepped = prepare_critic_params(params)   # one-time repack, off the hot path

    critic_fwd = jax.jit(critic_forward)
    q = jax.block_until_ready(critic_fwd(x, action, prepped))

    q_ref = critic_reference(x, action, params)
    assert q.shape == (batch, 1)
    assert jnp.allclose(q, q_ref, atol=1e-4, rtol=1e-4), "mismatch vs reference"

    print("KERNEL_OK")
</pallas_src>

<mosaic_0001>
module attributes {stable_mosaic.version = 11 : i64} {
  func.func @_critic_kernel(%arg0: i32, %arg1: memref<16x256xf32, #tpu.memory_space<vmem>>, %arg2: memref<4x256xf32, #tpu.memory_space<vmem>>, %arg3: memref<32x16xf32, #tpu.memory_space<vmem>>, %arg4: memref<32x1xf32, #tpu.memory_space<vmem>>, %arg5: memref<32x4xf32, #tpu.memory_space<vmem>>, %arg6: memref<32x1xf32, #tpu.memory_space<vmem>>, %arg7: memref<32x32xf32, #tpu.memory_space<vmem>>, %arg8: memref<32x32xf32, #tpu.memory_space<vmem>>, %arg9: memref<32x1xf32, #tpu.memory_space<vmem>>, %arg10: memref<1x32xf32, #tpu.memory_space<vmem>>, %arg11: memref<1x1xf32, #tpu.memory_space<smem>>, %arg12: memref<1x256xf32, #tpu.memory_space<vmem>>) attributes {dimension_semantics = [#tpu.dimension_semantics<parallel>], iteration_bounds = array<i64: 1>, scalar_prefetch = 0 : i64, scratch_operands = 0 : i64, tpu.core_type = #tpu.core_type<tc>, window_params = [{transform_indices = @transform_0, window_bounds = array<i64: 16, 256>}, {transform_indices = @transform_1, window_bounds = array<i64: 4, 256>}, {pipeline_mode = #tpu.pipeline_mode<synchronous>, transform_indices = @transform_2, window_bounds = array<i64: 32, 16>}, {pipeline_mode = #tpu.pipeline_mode<synchronous>, transform_indices = @transform_3, window_bounds = array<i64: 32, 1>}, {pipeline_mode = #tpu.pipeline_mode<synchronous>, transform_indices = @transform_4, window_bounds = array<i64: 32, 4>}, {pipeline_mode = #tpu.pipeline_mode<synchronous>, transform_indices = @transform_5, window_bounds = array<i64: 32, 1>}, {pipeline_mode = #tpu.pipeline_mode<synchronous>, transform_indices = @transform_6, window_bounds = array<i64: 32, 32>}, {pipeline_mode = #tpu.pipeline_mode<synchronous>, transform_indices = @transform_7, window_bounds = array<i64: 32, 32>}, {pipeline_mode = #tpu.pipeline_mode<synchronous>, transform_indices = @transform_8, window_bounds = array<i64: 32, 1>}, {pipeline_mode = #tpu.pipeline_mode<synchronous>, transform_indices = @transform_9, window_bounds = array<i64: 1, 32>}, {transform_indices = @transform_10, window_bounds = array<i64: 1, 1>}, {transform_indices = @transform_11, window_bounds = array<i64: 1, 256>}]} {
    %c0 = arith.constant 0 : index
    %c0_0 = arith.constant 0 : index
    %0 = vector.load %arg3[%c0, %c0_0] : memref<32x16xf32, #tpu.memory_space<vmem>>, vector<32x16xf32>
    %c0_1 = arith.constant 0 : index
    %c0_2 = arith.constant 0 : index
    %1 = vector.load %arg1[%c0_1, %c0_2] : memref<16x256xf32, #tpu.memory_space<vmem>>, vector<16x256xf32>
    %cst = arith.constant dense<0.000000e+00> : vector<32x256xf32>
    %2 = tpu.matmul %0, %1, %cst {dimension_numbers = #tpu.dot_dimension_numbers<[1], [0], [0], [1], [0, 0, 1, 1], [], []>} : vector<32x16xf32>, vector<16x256xf32>, vector<32x256xf32> -> vector<32x256xf32>
    %c0_3 = arith.constant 0 : index
    %c0_4 = arith.constant 0 : index
    %3 = vector.load %arg4[%c0_3, %c0_4] : memref<32x1xf32, #tpu.memory_space<vmem>>, vector<32x1xf32>
    %4 = vector.broadcast %3 : vector<32x1xf32> to vector<32x256xf32>
    %5 = arith.addf %2, %4 : vector<32x256xf32>
    %cst_5 = arith.constant 0.000000e+00 : f32
    %6 = vector.broadcast %cst_5 : f32 to vector<32x256xf32>
    %7 = arith.maximumf %5, %6 : vector<32x256xf32>
    %c0_6 = arith.constant 0 : index
    %c0_7 = arith.constant 0 : index
    %8 = vector.load %arg5[%c0_6, %c0_7] : memref<32x4xf32, #tpu.memory_space<vmem>>, vector<32x4xf32>
    %c0_8 = arith.constant 0 : index
    %c0_9 = arith.constant 0 : index
    %9 = vector.load %arg2[%c0_8, %c0_9] : memref<4x256xf32, #tpu.memory_space<vmem>>, vector<4x256xf32>
    %cst_10 = arith.constant dense<0.000000e+00> : vector<32x256xf32>
    %10 = tpu.matmul %8, %9, %cst_10 {dimension_numbers = #tpu.dot_dimension_numbers<[1], [0], [0], [1], [0, 0, 1, 1], [], []>} : vector<32x4xf32>, vector<4x256xf32>, vector<32x256xf32> -> vector<32x256xf32>
    %c0_11 = arith.constant 0 : index
    %c0_12 = arith.constant 0 : index
    %11 = vector.load %arg6[%c0_11, %c0_12] : memref<32x1xf32, #tpu.memory_space<vmem>>, vector<32x1xf32>
    %12 = vector.broadcast %11 : vector<32x1xf32> to vector<32x256xf32>
    %13 = arith.addf %10, %12 : vector<32x256xf32>
    %c0_13 = arith.constant 0 : index
    %c0_14 = arith.constant 0 : index
    %14 = vector.load %arg7[%c0_13, %c0_14] : memref<32x32xf32, #tpu.memory_space<vmem>>, vector<32x32xf32>
    %cst_15 = arith.constant dense<0.000000e+00> : vector<32x256xf32>
    %15 = tpu.matmul %14, %7, %cst_15 {dimension_numbers = #tpu.dot_dimension_numbers<[1], [0], [0], [1], [0, 0, 1, 1], [], []>} : vector<32x32xf32>, vector<32x256xf32>, vector<32x256xf32> -> vector<32x256xf32>
    %c0_16 = arith.constant 0 : index
    %c0_17 = arith.constant 0 : index
    %16 = vector.load %arg8[%c0_16, %c0_17] : memref<32x32xf32, #tpu.memory_space<vmem>>, vector<32x32xf32>
    %cst_18 = arith.constant dense<0.000000e+00> : vector<32x256xf32>
    %17 = tpu.matmul %16, %13, %cst_18 {dimension_numbers = #tpu.dot_dimension_numbers<[1], [0], [0], [1], [0, 0, 1, 1], [], []>} : vector<32x32xf32>, vector<32x256xf32>, vector<32x256xf32> -> vector<32x256xf32>
    %18 = arith.addf %15, %17 : vector<32x256xf32>
    %c0_19 = arith.constant 0 : index
    %c0_20 = arith.constant 0 : index
    %19 = vector.load %arg9[%c0_19, %c0_20] : memref<32x1xf32, #tpu.memory_space<vmem>>, vector<32x1xf32>
    %20 = vector.broadcast %19 : vector<32x1xf32> to vector<32x256xf32>
    %21 = arith.addf %18, %20 : vector<32x256xf32>
    %cst_21 = arith.constant 0.000000e+00 : f32
    %22 = vector.broadcast %cst_21 : f32 to vector<32x256xf32>
    %23 = arith.maximumf %21, %22 : vector<32x256xf32>
    %c0_22 = arith.constant 0 : index
    %c0_23 = arith.constant 0 : index
    %24 = vector.load %arg10[%c0_22, %c0_23] : memref<1x32xf32, #tpu.memory_space<vmem>>, vector<1x32xf32>
    %cst_24 = arith.constant dense<0.000000e+00> : vector<1x256xf32>
    %25 = tpu.matmul %24, %23, %cst_24 {dimension_numbers = #tpu.dot_dimension_numbers<[1], [0], [0], [1], [0, 0, 1, 1], [], []>} : vector<1x32xf32>, vector<32x256xf32>, vector<1x256xf32> -> vector<1x256xf32>
    %c0_25 = arith.constant 0 : index
    %c0_26 = arith.constant 0 : index
    %26 = memref.load %arg11[%c0_25, %c0_26] : memref<1x1xf32, #tpu.memory_space<smem>>
    %27 = vector.broadcast %26 : f32 to vector<1x256xf32>
    %28 = arith.addf %25, %27 : vector<1x256xf32>
    %c0_27 = arith.constant 0 : index
    %c0_28 = arith.constant 0 : index
    %29 = vector.load %arg12[%c0_27, %c0_28] : memref<1x256xf32, #tpu.memory_space<vmem>>, vector<1x256xf32>
    tpu.vector_store %arg12[%c0_27, %c0_28], %28 {strides = array<i32>} : memref<1x256xf32, #tpu.memory_space<vmem>>, vector<1x256xf32>,
    return
  }
  func.func @transform_0(%arg0: i32) -> (i32, i32) {
    %c0_i32 = arith.constant 0 : i32
    %c0_i32_0 = arith.constant 0 : i32
    return %c0_i32, %arg0 : i32, i32
  }
  func.func @transform_1(%arg0: i32) -> (i32, i32) {
    %c0_i32 = arith.constant 0 : i32
    %c0_i32_0 = arith.constant 0 : i32
    return %c0_i32, %arg0 : i32, i32
  }
  func.func @transform_2(%arg0: i32) -> (i32, i32) {
    %c0_i32 = arith.constant 0 : i32
    %c0_i32_0 = arith.constant 0 : i32
    %c0_i32_1 = arith.constant 0 : i32
    return %c0_i32, %c0_i32_0 : i32, i32
  }
  func.func @transform_3(%arg0: i32) -> (i32, i32) {
    %c0_i32 = arith.constant 0 : i32
    %c0_i32_0 = arith.constant 0 : i32
    %c0_i32_1 = arith.constant 0 : i32
    return %c0_i32, %c0_i32_0 : i32, i32
  }
  func.func @transform_4(%arg0: i32) -> (i32, i32) {
    %c0_i32 = arith.constant 0 : i32
    %c0_i32_0 = arith.constant 0 : i32
    %c0_i32_1 = arith.constant 0 : i32
    return %c0_i32, %c0_i32_0 : i32, i32
  }
  func.func @transform_5(%arg0: i32) -> (i32, i32) {
    %c0_i32 = arith.constant 0 : i32
    %c0_i32_0 = arith.constant 0 : i32
    %c0_i32_1 = arith.constant 0 : i32
    return %c0_i32, %c0_i32_0 : i32, i32
  }
  func.func @transform_6(%arg0: i32) -> (i32, i32) {
    %c0_i32 = arith.constant 0 : i32
    %c0_i32_0 = arith.constant 0 : i32
    %c0_i32_1 = arith.constant 0 : i32
    return %c0_i32, %c0_i32_0 : i32, i32
  }
  func.func @transform_7(%arg0: i32) -> (i32, i32) {
    %c0_i32 = arith.constant 0 : i32
    %c0_i32_0 = arith.constant 0 : i32
    %c0_i32_1 = arith.constant 0 : i32
    return %c0_i32, %c0_i32_0 : i32, i32
  }
  func.func @transform_8(%arg0: i32) -> (i32, i32) {
    %c0_i32 = arith.constant 0 : i32
    %c0_i32_0 = arith.constant 0 : i32
    %c0_i32_1 = arith.constant 0 : i32
    return %c0_i32, %c0_i32_0 : i32, i32
  }
  func.func @transform_9(%arg0: i32) -> (i32, i32) {
    %c0_i32 = arith.constant 0 : i32
    %c0_i32_0 = arith.constant 0 : i32
    %c0_i32_1 = arith.constant 0 : i32
    return %c0_i32, %c0_i32_0 : i32, i32
  }
  func.func @transform_10(%arg0: i32) -> (i32, i32) {
    %c0_i32 = arith.constant 0 : i32
    %c0_i32_0 = arith.constant 0 : i32
    %c0_i32_1 = arith.constant 0 : i32
    return %c0_i32, %c0_i32_0 : i32, i32
  }
  func.func @transform_11(%arg0: i32) -> (i32, i32) {
    %c0_i32 = arith.constant 0 : i32
    %c0_i32_0 = arith.constant 0 : i32
    return %c0_i32, %arg0 : i32, i32
  }
}

</mosaic_0001>

<bundles_post_ra>
// kernel: critic_forward.1
= control target key start
LH: loop header
LB: loop body
LE: loop exit
PB: predicated region body
PF: predicated region fallthrough
CT: control target
= control target key end

     0   :  { %vm225_vm0 = vcmask 1043456   ;;  %v739_v3 = vmov 0.0   ;;  %v740_v8 = vmov 0   ;;  %vm212_vm1 = vcmask 31744   ;;  %s946_s0 = inlined_call_operand.vmem [shape: f32[16,200], index: 0, kind: input, shape index: {}]   ;;  %s947_s1 = inlined_call_operand.vmem [shape: f32[4,200], index: 1, kind: input, shape index: {}]   ;;  %s948_s4 = inlined_call_operand.vmem [shape: f32[32,4], index: 4, kind: input, shape index: {}]   ;;  %s949_s2 = inlined_call_operand.vmem [shape: f32[32,16], index: 2, kind: input, shape index: {}]   ;;  %s950_s5 = inlined_call_operand.vmem [shape: f32[32,1], index: 5, kind: input, shape index: {}]   ;;  %s951_s3 = inlined_call_operand.vmem [shape: f32[32,1], index: 3, kind: input, shape index: {}]   ;;  %s952_s8 = inlined_call_operand.vmem [shape: f32[32,1], index: 8, kind: input, shape index: {}]   ;;  %s953_s7 = inlined_call_operand.vmem [shape: f32[32,32], index: 7, kind: input, shape index: {}]   ;;  %s954_s6 = inlined_call_operand.vmem [shape: f32[32,32], index: 6, kind: input, shape index: {}]   ;;  %s955_s9 = inlined_call_operand.vmem [shape: f32[1,32], index: 9, kind: input, shape index: {}]   ;;  %s956_s10 = inlined_call_operand.<no memory space> [shape: f32[1,1], index: 10, kind: input, shape index: {}]   ;;  %s957_s11 = inlined_call_operand.vmem [shape: f32[1,256], index: 11, kind: output, shape index: {}]  }
   0x1   :  { %v44_v0 = vld [vmem:[%s946_s0 + $0x8] sm:$0xff]  ;;  %v46_v1 = vld [vmem:[%s946_s0 + $0x18] sm:$0xff]  ;;  %v185_v2 = vld [vmem:[%s947_s1] sm:$0xff]  ;;  %294 = vmatprep.mubr.f32.mxu1 %v739_v3  ;;  %148 = vmatprep.mubr.f32.mxu0 %v739_v3  ;;  %vm71_vm2 = vcmask 130048   ;;  %vm327_vm3 = vcmask 261120  }
   0x2   :  { %v693_v4 = vpack.c.bf16 %v46_v1, %v44_v0  ;;  %v211_v5 = vcombine.high %v185_v2, %v185_v2  ;;  %v43_v6 = vld [vmem:[%s946_s0] sm:$0xff]  ;;  %v45_v7 = vld [vmem:[%s946_s0 + $0x10] sm:$0xff]  ;;  %736 = vset.pattern.permute.xlu0 %v740_v8  ;;  %737 = vset.pattern.permute.xlu1 %v740_v8  ;;  %v182_v14 = vld [vmem:[%s948_s4 + $0x8] sm:$0xff] }
   0x3   :  { %v695_v9 = vpack.c.bf16 %v45_v7, %v43_v6  ;;  %v181_v10 = vld [vmem:[%s948_s4] sm:$0xff]  ;;  %v188_v13 = vld [vmem:[%s950_s5 + $0x10] sm:$0xff]  ;;  %v187_v15 = vld [vmem:[%s950_s5 + $0x8] sm:$0xff] }
   0x4   :  { %694 = vmatprep.subr.bf16.mxu0 %v693_v4  ;;  %678 = vmatprep.subr.msk.mxu1 %vm225_vm0, %v211_v5  ;;  %v39_v11 = vld [vmem:[%s949_s2] sm:$0xff]  ;;  %v189_v16 = vld [vmem:[%s950_s5 + $0x18] sm:$0xff]  ;;  %v40_v17 = vld [vmem:[%s949_s2 + $0x8] sm:$0xff] }
   0x5   :  { %696 = vmatpush1.bf16.msra.mxu0 %v695_v9  ;;  %679 = vmatpush1.msk.msra.mxu1 %vm225_vm0, %v185_v2  ;;  %v186_v12 = vld [vmem:[%s950_s5] sm:$0xff]  ;;  %v183_v18 = vld [vmem:[%s948_s4 + $0x10] sm:$0xff]  ;;  %v48_v20 = vld [vmem:[%s951_s3 + $0x8] sm:$0xff] }
   0x6   :  { %680 = vmatmul.mubr.msk.f32.vlgmr.msra.gmra.mrb[0].mxu1 %vm212_vm1, %v181_v10  ;;  %192 = vperm.xlu0 %736, %v186_v12   ;;  %v47_v19 = vld [vmem:[%s951_s3] sm:$0xff]  ;;  %v41_v21 = vld [vmem:[%s949_s2 + $0x10] sm:$0xff]  ;;  %v184_v22 = vld [vmem:[%s948_s4 + $0x18] sm:$0xff] }
   0x7   :  { %300 = vmatprep.mubr.f32.mxu1 %v739_v3  ;;  %202 = vperm.xlu1 %737, %v188_v13   ;;  %v49_v23 = vld [vmem:[%s951_s3 + $0x10] sm:$0xff]  ;;  %v50_v24 = vld [vmem:[%s951_s3 + $0x18] sm:$0xff]  ;;  %v530_v26 = vld [vmem:[%s952_s8] sm:$0xff] }
   0x8   :  { %674 = vmatmul.mubr.msk.f32.vlgmr.msra.gmra.mrb[0].mxu0 %vm71_vm2, %v39_v11  ;;  %v42_v25 = vld [vmem:[%s949_s2 + $0x18] sm:$0xff]  ;;  %v531_v27 = vld [vmem:[%s952_s8 + $0x8] sm:$0xff]  ;;  %v532_v28 = vld [vmem:[%s952_s8 + $0x10] sm:$0xff] }
   0x9   :  { %154 = vmatprep.mubr.f32.mxu0 %v739_v3  ;;  %v533_v29 = vld [vmem:[%s952_s8 + $0x18] sm:$0xff] }
   0xa   :  { %681 = vmatmul.mubr.msk.f32.gmra.mrb[2].mxu1 %vm212_vm1, %v182_v14  ;;  %197 = vperm.xlu0 %736, %v187_v15  }
   0xb   :  { %306 = vmatprep.mubr.f32.mxu1 %v739_v3  ;;  %207 = vperm.xlu1 %737, %v189_v16  }
   0xc   :  { %675 = vmatmul.mubr.msk.f32.gmra.mrb[2].mxu0 %vm71_vm2, %v40_v17 }
   0xd   :  { %160 = vmatprep.mubr.f32.mxu0 %v739_v3 }
   0xe   :  { %682 = vmatmul.mubr.msk.f32.gmra.mrb[4].mxu1 %vm212_vm1, %v183_v18  ;;  %53 = vperm.xlu0 %736, %v47_v19  }
   0xf   :  { %312 = vmatprep.mubr.f32.mxu1 %v739_v3  ;;  %58 = vperm.xlu1 %737, %v48_v20  }
  0x10   :  { %676 = vmatmul.mubr.msk.f32.gmra.mrb[4].mxu0 %vm71_vm2, %v41_v21 }
  0x11   :  { %166 = vmatprep.mubr.f32.mxu0 %v739_v3 }
  0x12   :  { %683 = vmatmul.mubr.msk.f32.gmra.mrb[6].mxu1 %vm212_vm1, %v184_v22  ;;  %63 = vperm.xlu0 %736, %v49_v23   ;;  %v323_v22 = vld [vmem:[%s953_s7] sm:$0xff] }
  0x13   :  { %68 = vperm.xlu1 %737, %v50_v24   ;;  %404 = vmatprep.mubr.f32.mxu1 %v739_v3  ;;  %v324_v24 = vld [vmem:[%s953_s7 + $0x8] sm:$0xff] }
  0x14   :  { %677 = vmatmul.mubr.msk.f32.gmra.mrb[6].mxu0 %vm71_vm2, %v42_v25  ;;  %v319_v25 = vld [vmem:[%s954_s6] sm:$0xff] }
  0x15   :  { %505 = vmatprep.mubr.f32.mxu0 %v739_v3 }
  0x16   :  { %536 = vperm.xlu0 %736, %v530_v26   ;;  %v325_v26 = vld [vmem:[%s953_s7 + $0x10] sm:$0xff] }
  0x17   :  { %541 = vperm.xlu1 %737, %v531_v27   ;;  %v320_v27 = vld [vmem:[%s954_s6 + $0x8] sm:$0xff] }
  0x1a   :  { %546 = vperm.xlu0 %736, %v532_v28   ;;  %v326_v28 = vld [vmem:[%s953_s7 + $0x18] sm:$0xff] }
  0x1b   :  { %551 = vperm.xlu1 %737, %v533_v29   ;;  %v321_v29 = vld [vmem:[%s954_s6 + $0x10] sm:$0xff] }
  0x85   :  { %v193_v30 = vpop.permute.xlu0 %192 }
  0x86   :  { %v203_v31 = vpop.permute.xlu1 %202 }
  0x89   :  { %v198_v32 = vpop.permute.xlu0 %197 }
  0x8a   :  { %v208_v33 = vpop.permute.xlu1 %207 }
  0x8d   :  { %v54_v36 = vpop.permute.xlu0 %53 }
  0x8e   :  { %v59_v44 = vpop.permute.xlu1 %58 }
  0x91   :  { %v64_v63 = vpop.permute.xlu0 %63 }
  0x92   :  { %v69_v7 = vpop.permute.xlu1 %68 }
  0xd9   :  { %v296_v34 = vpop.f32.mrb[0].mxu1 }
  0xda   :  { %v298_v35 = vpop.f32.mrb[1].mxu1  ;;  %v297_v41 = vadd.f32 %v296_v34, %v193_v30 }
  0xdb   :  { %v150_v37 = vpop.f32.mrb[0].mxu0  ;;  %v299_v45 = vadd.f32 %v298_v35, %v193_v30  ;;  %v322_v30 = vld [vmem:[%s954_s6 + $0x18] sm:$0xff] }
  0xdc   :  { %v151_v38 = vadd.f32 %v150_v37, %v54_v36  ;;  %v152_v39 = vpop.f32.mrb[1].mxu0 }
  0xdd   :  { %v302_v40 = vpop.f32.mrb[2].mxu1  ;;  %v153_v46 = vadd.f32 %v152_v39, %v54_v36  ;;  %v537_v39 = vpop.permute.xlu0 %536 }
  0xde   :  { %v303_v42 = vadd.f32 %v302_v40, %v198_v32  ;;  %v304_v43 = vpop.f32.mrb[3].mxu1  ;;  %v173_v49 = vmax.f32 %v151_v38, 0.0 }
  0xdf   :  { %v305_v47 = vadd.f32 %v304_v43, %v198_v32  ;;  %v156_v48 = vpop.f32.mrb[2].mxu0  ;;  %v174_v58 = vmax.f32 %v153_v46, 0.0 }
  0xe0   :  { %v699_v50 = vpack.c.bf16 %v303_v42, %v297_v41  ;;  %v157_v51 = vadd.f32 %v156_v48, %v59_v44  ;;  %v158_v52 = vpop.f32.mrb[3].mxu0 }
  0xe1   :  { %v697_v53 = vpack.c.bf16 %v305_v47, %v299_v45  ;;  %v159_v54 = vadd.f32 %v158_v52, %v59_v44  ;;  %v308_v55 = vpop.f32.mrb[4].mxu1  ;;  %v542_v45 = vpop.permute.xlu1 %541 }
  0xe2   :  { %v175_v56 = vmax.f32 %v157_v51, 0.0  ;;  %v310_v57 = vpop.f32.mrb[5].mxu1  ;;  %v309_v2 = vadd.f32 %v308_v55, %v203_v31 }
  0xe3   :  { %v176_v59 = vmax.f32 %v159_v54, 0.0  ;;  %v162_v60 = vpop.f32.mrb[4].mxu0  ;;  %698 = vmatprep.subr.bf16.mxu1 %v697_v53  ;;  %v311_v8 = vadd.f32 %v310_v57, %v203_v31 }
  0xe4   :  { %v707_v61 = vpack.c.bf16 %v175_v56, %v173_v49  ;;  %v164_v62 = vpop.f32.mrb[5].mxu0  ;;  %700 = vmatpush1.bf16.msra.mxu1 %v699_v50  ;;  %v163_v4 = vadd.f32 %v162_v60, %v64_v63  ;;  %v547_v60 = vpop.permute.xlu0 %546 }
  0xe5   :  { %v705_v0 = vpack.c.bf16 %v176_v59, %v174_v58  ;;  %v314_v1 = vpop.f32.mrb[6].mxu1  ;;  %v165_v9 = vadd.f32 %v164_v62, %v64_v63  ;;  %v552_v62 = vpop.permute.xlu1 %551 }
  0xe6   :  { %v315_v5 = vadd.f32 %v314_v1, %v208_v33  ;;  %v316_v6 = vpop.f32.mrb[7].mxu1  ;;  %v177_v17 = vmax.f32 %v163_v4, 0.0 }
  0xe7   :  { %v317_v10 = vadd.f32 %v316_v6, %v208_v33  ;;  %v168_v11 = vpop.f32.mrb[6].mxu0  ;;  %706 = vmatprep.subr.bf16.mxu0 %v705_v0  ;;  %v178_v19 = vmax.f32 %v165_v9, 0.0 }
  0xe8   :  { %v703_v12 = vpack.c.bf16 %v315_v5, %v309_v2  ;;  %v169_v13 = vadd.f32 %v168_v11, %v69_v7  ;;  %v170_v14 = vpop.f32.mrb[7].mxu0  ;;  %708 = vmatpush1.bf16.msra.mxu0 %v707_v61  ;;  %v570_v11 = vld [vmem:[%s955_s9] sm:$0x1] }
  0xe9   :  { %v701_v15 = vpack.c.bf16 %v317_v10, %v311_v8  ;;  %v171_v16 = vadd.f32 %v170_v14, %v69_v7  ;;  %v653_v14 = vlaneseq }
  0xea   :  { %v179_v18 = vmax.f32 %v169_v13, 0.0 }
  0xeb   :  { %v180_v20 = vmax.f32 %v171_v16, 0.0  ;;  %702 = vmatprep.subr.bf16.mxu1 %v701_v15  ;;  %v572_v15 = vstv %s956_s10  ;;  %vm667_vm4 = vcmp.lt.s32.totalorder %v653_v14, 256 }
  0xec   :  { %v711_v21 = vpack.c.bf16 %v179_v18, %v177_v17  ;;  %704 = vmatpush1.bf16.msra.mxu1 %v703_v12  ;;  %v741_v12 = vmov 1966171168   ;;  %v654_v17 = vshrl.u32 %v653_v14, 7 }
  0xed   :  { %v709_v23 = vpack.c.bf16 %v180_v20, %v178_v19  ;;  %721 = vmatprep.subr.bf16.mxu1 %v705_v0  ;;  %v651_v13 = vunpack.c.l.s4 %v741_v12 }
  0xef   :  { %684 = vmatmul.mubr.msk.f32.vlgmr.msra.gmra.mrb[8].mxu1 %vm327_vm3, %v323_v22  ;;  %710 = vmatprep.subr.bf16.mxu0 %v709_v23  ;;  %v652_v16 = vunpack.c.0.s8 %v651_v13 }
  0xf0   :  { %723 = vmatpush1.bf16.msra.mxu1 %v707_v61  ;;  %712 = vmatpush1.bf16.msra.mxu0 %v711_v21 }
  0xf1   :  { %722 = vmatprep.subr.bf16.mxu1 %v709_v23  ;;  %410 = vmatprep.mubr.f32.mxu1 %v739_v3  ;;  %v655_v22 = vsub.s32 %v652_v16, %v654_v17 }
  0xf3   :  { %685 = vmatmul.mubr.msk.f32.gmra.mrb[10].mxu1 %vm327_vm3, %v324_v24  ;;  %688 = vmatmul.mubr.msk.f32.vlgmr.msra.gmra.mrb[8].mxu0 %vm327_vm3, %v319_v25 }
  0xf4   :  { %724 = vmatpush1.bf16.msra.mxu1 %v711_v21  ;;  %416 = vmatprep.mubr.f32.mxu1 %v739_v3 }
  0xf5   :  { %511 = vmatprep.mubr.f32.mxu0 %v739_v3 }
  0xf7   :  { %686 = vmatmul.mubr.msk.f32.gmra.mrb[12].mxu1 %vm327_vm3, %v325_v26  ;;  %689 = vmatmul.mubr.msk.f32.gmra.mrb[10].mxu0 %vm327_vm3, %v320_v27 }
  0xf8   :  { %422 = vmatprep.mubr.f32.mxu1 %v739_v3  ;;  %517 = vmatprep.mubr.f32.mxu0 %v739_v3 }
  0xfb   :  { %687 = vmatmul.mubr.msk.f32.gmra.mrb[14].mxu1 %vm327_vm3, %v326_v28  ;;  %690 = vmatmul.mubr.msk.f32.gmra.mrb[12].mxu0 %vm327_vm3, %v321_v29 }
  0xfc   :  { %523 = vmatprep.mubr.f32.mxu1 %v739_v3  ;;  %640 = vmatprep.mubr.f32.mxu0 %v739_v3 }
 0x103   :  { %691 = vmatmul.mubr.msk.f32.vlgmr.msra.gmra.mrb[14].mxu1 %vm327_vm3, %v322_v30 }
 0x1c2   :  { %v406_v31 = vpop.f32.mrb[8].mxu1 }
 0x1c3   :  { %v408_v32 = vpop.f32.mrb[9].mxu1 }
 0x1c6   :  { %v507_v33 = vpop.f32.mrb[8].mxu0  ;;  %v412_v34 = vpop.f32.mrb[10].mxu1 }
 0x1c7   :  { %v508_v35 = vadd.f32 %v507_v33, %v406_v31  ;;  %v509_v36 = vpop.f32.mrb[9].mxu0  ;;  %v414_v37 = vpop.f32.mrb[11].mxu1 }
 0x1c8   :  { %v510_v38 = vadd.f32 %v509_v36, %v408_v32 }
 0x1c9   :  { %v554_v42 = vadd.f32 %v537_v39, %v508_v35 }
 0x1ca   :  { %v513_v40 = vpop.f32.mrb[10].mxu0  ;;  %v418_v41 = vpop.f32.mrb[12].mxu1  ;;  %v555_v46 = vadd.f32 %v537_v39, %v510_v38 }
 0x1cb   :  { %v514_v43 = vadd.f32 %v513_v40, %v412_v34  ;;  %v515_v3 = vpop.f32.mrb[11].mxu0  ;;  %v420_v44 = vpop.f32.mrb[13].mxu1  ;;  %v562_v51 = vmax.f32 %v554_v42, 0.0 }
 0x1cc   :  { %v516_v47 = vadd.f32 %v515_v3, %v414_v37  ;;  %v563_v55 = vmax.f32 %v555_v46, 0.0 }
 0x1cd   :  { %v556_v48 = vadd.f32 %v542_v45, %v514_v43 }
 0x1ce   :  { %v557_v49 = vadd.f32 %v542_v45, %v516_v47  ;;  %v519_v50 = vpop.f32.mrb[12].mxu0 }
 0x1cf   :  { %v564_v52 = vmax.f32 %v556_v48, 0.0  ;;  %v520_v53 = vadd.f32 %v519_v50, %v418_v41  ;;  %v521_v54 = vpop.f32.mrb[13].mxu0 }
 0x1d0   :  { %v565_v56 = vmax.f32 %v557_v49, 0.0  ;;  %v522_v57 = vadd.f32 %v521_v54, %v420_v44 }
 0x1d1   :  { %v715_v58 = vpack.c.bf16 %v564_v52, %v562_v51  ;;  %v558_v61 = vadd.f32 %v547_v60, %v520_v53 }
 0x1d2   :  { %v713_v59 = vpack.c.bf16 %v565_v56, %v563_v55  ;;  %v559_v63 = vadd.f32 %v547_v60, %v522_v57 }
 0x1d3   :  { %v566_v5 = vmax.f32 %v558_v61, 0.0 }
 0x1d4   :  { %714 = vmatprep.subr.bf16.mxu0 %v713_v59  ;;  %v567_v7 = vmax.f32 %v559_v63, 0.0 }
 0x1d5   :  { %716 = vmatpush1.bf16.msra.mxu0 %v715_v58 }
 0x1d6   :  { %v525_v0 = vpop.f32.mrb[14].mxu1 }
 0x1d7   :  { %v560_v1 = vadd.f32 %v552_v62, %v525_v0  ;;  %v527_v2 = vpop.f32.mrb[15].mxu1 }
 0x1d8   :  { %v561_v4 = vadd.f32 %v552_v62, %v527_v2 }
 0x1d9   :  { %v568_v6 = vmax.f32 %v560_v1, 0.0 }
 0x1da   :  { %v569_v8 = vmax.f32 %v561_v4, 0.0 }
 0x1db   :  { %v719_v9 = vpack.c.bf16 %v568_v6, %v566_v5 }
 0x1dc   :  { %v717_v10 = vpack.c.bf16 %v569_v8, %v567_v7 }
 0x1de   :  { %718 = vmatprep.subr.bf16.mxu0 %v717_v10 }
 0x1df   :  { %720 = vmatpush1.bf16.msra.mxu0 %v719_v9 }
 0x1e2   :  { %692 = vmatmul.mubr.msk.f32.vlgmr.msra.gmra.mrb[14].mxu0 %vm327_vm3, %v570_v11 }
 0x2b5   :  { %v642_v18 = vpop.f32.mrb[14].mxu0 }
 0x2b6   :  { %v643_v19 = vadd.f32 %v642_v18, %v572_v15  ;;  %v644_v20 = vpop.f32.mrb[15].mxu0 }
 0x2b7   :  { %v645_v21 = vadd.f32 %v644_v20, %v572_v15 }
 0x2b9   :  { %v649_v23 = vcombine.low %v643_v19, %v645_v21 }
 0x2bb   :  { %v656_v24 = vrot.slane %v649_v23, %v655_v22 }
 0x2bd   :  { %v663_v25 = vrot.slane %v656_v24, %v655_v22 }
 0x2bf   :  { %669 = vst.msk [vmem:[%s957_s11] sm:$0x3] %vm667_vm4, %v663_v25 }

</bundles_post_ra>
